<compile_context>
chip_gen: v6e
topology: v6e:2x2x1
jax: 0.10.0
libtpu: 0.0.40
codegen_flags: <defaults>
</compile_context>

<pallas_src>
import functools

import jax
import jax.numpy as jnp
import numpy as np
from jax import lax
from jax.experimental import pallas as pl
from jax.experimental.pallas import tpu as pltpu


# ----------------------------------------------------------------------------
# Fused kernel: (positional add) + num_layers x TransformerEncoderLayer
# ----------------------------------------------------------------------------

def _layernorm(x, w, b, eps):
    mu = jnp.mean(x, axis=-1, keepdims=True)
    xc = x - mu
    var = jnp.mean(xc * xc, axis=-1, keepdims=True)
    return xc * lax.rsqrt(var + eps) * w + b


def _fused_transformer_kernel(
        x_ref, pos_ref,
        wqkv_ref, bqkv_ref, wo_ref, bo_ref,
        ln1w_ref, ln1b_ref, w1_ref, b1_ref, w2_ref, b2_ref,
        ln2w_ref, ln2b_ref,
        o_ref,
        x_sc,
        *, nhead, d_model, eps):
    layer = pl.program_id(1)
    num_layers = pl.num_programs(1)
    head_dim = d_model // nhead
    scale = 1.0 / float(head_dim) ** 0.5
    seq = x_sc.shape[0]

    # Layer 0: fold the positional-encoding add into the fused kernel and
    # initialize the VMEM-resident activation for this batch element.
    @pl.when(layer == 0)
    def _():
        x_sc[...] = (x_ref[0] + pos_ref[0]).astype(jnp.float32)

    x = x_sc[...]                                              # (S, D) f32

    # --- multi-head self attention (all heads batched, no slices/concat) ---
    # QKV projections for all (q|k|v, head) groups in one batched dot_general.
    xb = jnp.broadcast_to(x, (3 * nhead, seq, d_model))        # (3H, S, D)
    qkv = jnp.einsum("gsd,gde->gse", xb, wqkv_ref[0],
                     preferred_element_type=jnp.float32) + bqkv_ref[0]  # (3H,S,Dh)
    q = qkv[0 * nhead:1 * nhead] * scale                       # (H, S, Dh)
    k = qkv[1 * nhead:2 * nhead]
    v = qkv[2 * nhead:3 * nhead]

    s = jnp.einsum("hqe,hke->hqk", q, k,
                   preferred_element_type=jnp.float32)          # (H, S, S)
    s = s - jnp.max(s, axis=-1, keepdims=True)
    p = jnp.exp(s)
    p = p * pl.reciprocal(jnp.sum(p, axis=-1, keepdims=True), approx=True)
    o = jnp.einsum("hqk,hke->hqe", p, v,
                   preferred_element_type=jnp.float32)          # (H, S, Dh)

    # Output projection: per-head partial products, summed over heads.
    attn = jnp.einsum("hse,hef->hsf", o, wo_ref[0],
                      preferred_element_type=jnp.float32)       # (H, S, D)
    attn = jnp.sum(attn, axis=0) + bo_ref[0]                    # (S, D)

    # --- residual + LayerNorm 1 ---
    y = _layernorm(x + attn, ln1w_ref[0], ln1b_ref[0], eps)

    # --- feed-forward (ReLU) ---
    h = jnp.dot(y, w1_ref[0], preferred_element_type=jnp.float32) + b1_ref[0]
    h = jnp.maximum(h, 0.0)
    h = jnp.dot(h, w2_ref[0], preferred_element_type=jnp.float32) + b2_ref[0]

    # --- residual + LayerNorm 2 ---
    z = _layernorm(y + h, ln2w_ref[0], ln2b_ref[0], eps)

    x_sc[...] = z

    @pl.when(layer == num_layers - 1)
    def _():
        o_ref[0] = z.astype(o_ref.dtype)


# ----------------------------------------------------------------------------
# One-time parameter preparation (hoisted out of the hot path)
# ----------------------------------------------------------------------------

def prepare_stacked_params(layer_params, *, nhead):
    """Stack per-layer PyTorch-layout params into (L, ...) arrays laid out for
    the fused kernel (x @ W form, per-head projection blocks)."""
    d_model = layer_params[0]["ln1_weight"].shape[0]
    head_dim = d_model // nhead

    def stack(fn):
        return jnp.stack([fn(p) for p in layer_params], axis=0)

    return {
        # (L, 3H, D, Dh): q/k/v per-head projection matrices (x @ W layout)
        "wqkv": stack(lambda p: p["in_proj_weight"].T
                      .reshape(d_model, 3, nhead, head_dim)
                      .transpose(1, 2, 0, 3)
                      .reshape(3 * nhead, d_model, head_dim)),
        "bqkv": stack(lambda p: p["in_proj_bias"].reshape(3 * nhead, 1, head_dim)),
        # (L, H, Dh, D): per-head slices of the output projection (x @ Wo^T)
        "wo":   stack(lambda p: p["out_proj_weight"].T.reshape(nhead, head_dim, d_model)),
        "bo":   stack(lambda p: p["out_proj_bias"][None, :]),
        "ln1w": stack(lambda p: p["ln1_weight"][None, :]),
        "ln1b": stack(lambda p: p["ln1_bias"][None, :]),
        "w1":   stack(lambda p: p["w1"].T),                  # (L, D, F)
        "b1":   stack(lambda p: p["b1"][None, :]),           # (L, 1, F)
        "w2":   stack(lambda p: p["w2"].T),                  # (L, F, D)
        "b2":   stack(lambda p: p["b2"][None, :]),           # (L, 1, D)
        "ln2w": stack(lambda p: p["ln2_weight"][None, :]),
        "ln2b": stack(lambda p: p["ln2_bias"][None, :]),
    }


# ----------------------------------------------------------------------------
# Forward wrapper: single fused pallas_call
# ----------------------------------------------------------------------------

def local_transformer_forward(x, positional_encoding, stacked, *, nhead, eps=1e-5):
    B, S, D = x.shape
    L = stacked["wqkv"].shape[0]
    F = stacked["w1"].shape[2]
    Dh = D // nhead

    def wspec(shape):
        n = len(shape)
        # stacked weights: pick the current layer's slab, full extent otherwise
        return pl.BlockSpec((1,) + shape, lambda b, l, _n=n: (l,) + (0,) * _n)

    kernel = functools.partial(_fused_transformer_kernel,
                               nhead=nhead, d_model=D, eps=eps)

    return pl.pallas_call(
        kernel,
        out_shape=jax.ShapeDtypeStruct((B, S, D), x.dtype),
        grid_spec=pltpu.PrefetchScalarGridSpec(
            num_scalar_prefetch=0,
            grid=(B, L),
            in_specs=[
                pl.BlockSpec((1, S, D), lambda b, l: (b, 0, 0)),   # x
                pl.BlockSpec((1, S, D), lambda b, l: (b, 0, 0)),   # pos enc
                wspec((3 * nhead, D, Dh)),                         # wqkv
                wspec((3 * nhead, 1, Dh)),                         # bqkv
                wspec((nhead, Dh, D)),                             # wo
                wspec((1, D)),                                     # bo
                wspec((1, D)), wspec((1, D)),                      # ln1 w, b
                wspec((D, F)), wspec((1, F)),                      # w1, b1
                wspec((F, D)), wspec((1, D)),                      # w2, b2
                wspec((1, D)), wspec((1, D)),                      # ln2 w, b
            ],
            out_specs=pl.BlockSpec((1, S, D), lambda b, l: (b, 0, 0)),
            scratch_shapes=[pltpu.VMEM((S, D), jnp.float32)],      # resident x
        ),
        compiler_params=pltpu.CompilerParams(
            dimension_semantics=("parallel", "arbitrary"),
        ),
    )(x, positional_encoding,
      stacked["wqkv"], stacked["bqkv"], stacked["wo"], stacked["bo"],
      stacked["ln1w"], stacked["ln1b"], stacked["w1"], stacked["b1"],
      stacked["w2"], stacked["b2"], stacked["ln2w"], stacked["ln2b"])


# ----------------------------------------------------------------------------
# Pure-JAX reference (mirrors PyTorch TransformerEncoderLayer, post-norm, ReLU,
# dropout=0.0 / eval-mode identity)
# ----------------------------------------------------------------------------

def _layernorm_ref(x, w, b, eps=1e-5):
    mu = jnp.mean(x, axis=-1, keepdims=True)
    var = jnp.mean((x - mu) ** 2, axis=-1, keepdims=True)
    return (x - mu) / jnp.sqrt(var + eps) * w + b


def _encoder_layer_ref(x, p, nhead):
    B, S, D = x.shape
    Dh = D // nhead
    qkv = x @ p["in_proj_weight"].T + p["in_proj_bias"]
    q, k, v = jnp.split(qkv, 3, axis=-1)

    def split_heads(t):
        return t.reshape(B, S, nhead, Dh).transpose(0, 2, 1, 3)  # (B, H, S, Dh)

    qh, kh, vh = split_heads(q), split_heads(k), split_heads(v)
    scores = jnp.einsum("bhqd,bhkd->bhqk", qh, kh) / (Dh ** 0.5)
    probs = jax.nn.softmax(scores, axis=-1)
    attn = jnp.einsum("bhqk,bhkd->bhqd", probs, vh)
    attn = attn.transpose(0, 2, 1, 3).reshape(B, S, D)
    attn = attn @ p["out_proj_weight"].T + p["out_proj_bias"]

    y = _layernorm_ref(x + attn, p["ln1_weight"], p["ln1_bias"])
    h = jnp.maximum(y @ p["w1"].T + p["b1"], 0.0)
    h = h @ p["w2"].T + p["b2"]
    return _layernorm_ref(y + h, p["ln2_weight"], p["ln2_bias"])


def local_transformer_ref(x, pos, layer_params, nhead):
    x = x + pos
    for p in layer_params:
        x = _encoder_layer_ref(x, p, nhead)
    return x


# ----------------------------------------------------------------------------
# Deterministic parameter construction
# ----------------------------------------------------------------------------

def make_layer_params(key, d_model, dim_feedforward):
    ks = jax.random.split(key, 8)
    s = 0.05
    return {
        "in_proj_weight": s * jax.random.normal(ks[0], (3 * d_model, d_model), jnp.float32),
        "in_proj_bias":   s * jax.random.normal(ks[1], (3 * d_model,), jnp.float32),
        "out_proj_weight": s * jax.random.normal(ks[2], (d_model, d_model), jnp.float32),
        "out_proj_bias":   s * jax.random.normal(ks[3], (d_model,), jnp.float32),
        "ln1_weight": jnp.ones((d_model,), jnp.float32),
        "ln1_bias":   jnp.zeros((d_model,), jnp.float32),
        "w1": s * jax.random.normal(ks[4], (dim_feedforward, d_model), jnp.float32),
        "b1": s * jax.random.normal(ks[5], (dim_feedforward,), jnp.float32),
        "w2": s * jax.random.normal(ks[6], (d_model, dim_feedforward), jnp.float32),
        "b2": s * jax.random.normal(ks[7], (d_model,), jnp.float32),
        "ln2_weight": jnp.ones((d_model,), jnp.float32),
        "ln2_bias":   jnp.zeros((d_model,), jnp.float32),
    }


if __name__ == "__main__":
    transformer_args = {
        "d_model": 32,
        "nhead": 4,
        "dim_feedforward": 64,
        "dropout": 0.0,   # dropout is identity (eval / p=0)
        "num_layers": 2,
    }
    B, S = 2, 8
    D = transformer_args["d_model"]
    H = transformer_args["nhead"]
    F = transformer_args["dim_feedforward"]
    L = transformer_args["num_layers"]

    root = jax.random.PRNGKey(0)
    kx, kp, kw = jax.random.split(root, 3)
    x = jax.random.normal(kx, (B, S, D), jnp.float32)
    pos = jax.random.normal(kp, (B, S, D), jnp.float32)
    layer_keys = jax.random.split(kw, L)
    layer_params = [make_layer_params(layer_keys[i], D, F) for i in range(L)]

    # One-time weight preparation (hoisted out of the forward hot path).
    stacked = prepare_stacked_params(layer_params, nhead=H)

    fwd = jax.jit(functools.partial(local_transformer_forward, nhead=H))
    out = jax.block_until_ready(fwd(x, pos, stacked))

    ref = local_transformer_ref(x, pos, layer_params, H)
    # Tolerance relaxed from 1e-4 to 1e-3 only because the softmax denominator
    # uses the approximate EUP reciprocal (pl.reciprocal(..., approx=True)).
    np.testing.assert_allclose(np.asarray(out), np.asarray(ref),
                               rtol=1e-3, atol=1e-3)

    print("KERNEL_OK")
</pallas_src>

<mosaic_0001>
module attributes {stable_mosaic.version = 11 : i64} {
  func.func @_fused_transformer_kernel(%arg0: i32, %arg1: i32, %arg2: memref<1x8x32xf32, #tpu.memory_space<vmem>>, %arg3: memref<1x8x32xf32, #tpu.memory_space<vmem>>, %arg4: memref<1x12x32x8xf32, #tpu.memory_space<vmem>>, %arg5: memref<1x12x1x8xf32, #tpu.memory_space<vmem>>, %arg6: memref<1x4x8x32xf32, #tpu.memory_space<vmem>>, %arg7: memref<1x1x32xf32, #tpu.memory_space<vmem>>, %arg8: memref<1x1x32xf32, #tpu.memory_space<vmem>>, %arg9: memref<1x1x32xf32, #tpu.memory_space<vmem>>, %arg10: memref<1x32x64xf32, #tpu.memory_space<vmem>>, %arg11: memref<1x1x64xf32, #tpu.memory_space<vmem>>, %arg12: memref<1x64x32xf32, #tpu.memory_space<vmem>>, %arg13: memref<1x1x32xf32, #tpu.memory_space<vmem>>, %arg14: memref<1x1x32xf32, #tpu.memory_space<vmem>>, %arg15: memref<1x1x32xf32, #tpu.memory_space<vmem>>, %arg16: memref<1x8x32xf32, #tpu.memory_space<vmem>>, %arg17: memref<8x32xf32, #tpu.memory_space<vmem>>) attributes {dimension_semantics = [#tpu.dimension_semantics<parallel>, #tpu.dimension_semantics<arbitrary>], iteration_bounds = array<i64: 2, 2>, scalar_prefetch = 0 : i64, scratch_operands = 1 : i64, tpu.core_type = #tpu.core_type<tc>, window_params = [{transform_indices = @transform_0, window_bounds = array<i64: 1, 8, 32>}, {transform_indices = @transform_1, window_bounds = array<i64: 1, 8, 32>}, {transform_indices = @transform_2, window_bounds = array<i64: 1, 12, 32, 8>}, {transform_indices = @transform_3, window_bounds = array<i64: 1, 12, 1, 8>}, {transform_indices = @transform_4, window_bounds = array<i64: 1, 4, 8, 32>}, {transform_indices = @transform_5, window_bounds = array<i64: 1, 1, 32>}, {transform_indices = @transform_6, window_bounds = array<i64: 1, 1, 32>}, {transform_indices = @transform_7, window_bounds = array<i64: 1, 1, 32>}, {transform_indices = @transform_8, window_bounds = array<i64: 1, 32, 64>}, {transform_indices = @transform_9, window_bounds = array<i64: 1, 1, 64>}, {transform_indices = @transform_10, window_bounds = array<i64: 1, 64, 32>}, {transform_indices = @transform_11, window_bounds = array<i64: 1, 1, 32>}, {transform_indices = @transform_12, window_bounds = array<i64: 1, 1, 32>}, {transform_indices = @transform_13, window_bounds = array<i64: 1, 1, 32>}, {transform_indices = @transform_14, window_bounds = array<i64: 1, 8, 32>}]} {
    %c0_i32 = arith.constant 0 : i32
    %0 = arith.cmpi eq, %arg1, %c0_i32 : i32
    %1 = arith.extui %0 : i1 to i32
    %c0_i32_0 = arith.constant 0 : i32
    %2 = arith.cmpi ne, %1, %c0_i32_0 : i32
    scf.if %2 {
      %c0_64 = arith.constant 0 : index
      %c0_65 = arith.constant 0 : index
      %c0_66 = arith.constant 0 : index
      %108 = vector.load %arg2[%c0_64, %c0_65, %c0_66] : memref<1x8x32xf32, #tpu.memory_space<vmem>>, vector<1x8x32xf32>
      %109 = vector.shape_cast %108 : vector<1x8x32xf32> to vector<8x32xf32>
      %c0_67 = arith.constant 0 : index
      %c0_68 = arith.constant 0 : index
      %c0_69 = arith.constant 0 : index
      %110 = vector.load %arg3[%c0_67, %c0_68, %c0_69] : memref<1x8x32xf32, #tpu.memory_space<vmem>>, vector<1x8x32xf32>
      %111 = vector.shape_cast %110 : vector<1x8x32xf32> to vector<8x32xf32>
      %112 = arith.addf %109, %111 : vector<8x32xf32>
      %c0_70 = arith.constant 0 : index
      %c0_71 = arith.constant 0 : index
      %113 = vector.load %arg17[%c0_70, %c0_71] : memref<8x32xf32, #tpu.memory_space<vmem>>, vector<8x32xf32>
      tpu.vector_store %arg17[%c0_70, %c0_71], %112 {strides = array<i32>} : memref<8x32xf32, #tpu.memory_space<vmem>>, vector<8x32xf32>,
    } else {
    }
    %c0 = arith.constant 0 : index
    %c0_1 = arith.constant 0 : index
    %3 = vector.load %arg17[%c0, %c0_1] : memref<8x32xf32, #tpu.memory_space<vmem>>, vector<8x32xf32>
    %4 = vector.shape_cast %3 : vector<8x32xf32> to vector<1x8x32xf32>
    %5 = vector.broadcast %4 : vector<1x8x32xf32> to vector<12x8x32xf32>
    %c0_2 = arith.constant 0 : index
    %c0_3 = arith.constant 0 : index
    %c0_4 = arith.constant 0 : index
    %c0_5 = arith.constant 0 : index
    %6 = vector.load %arg4[%c0_2, %c0_3, %c0_4, %c0_5] : memref<1x12x32x8xf32, #tpu.memory_space<vmem>>, vector<1x12x32x8xf32>
    %7 = vector.shape_cast %6 : vector<1x12x32x8xf32> to vector<12x32x8xf32>
    "tpu.trace_start"() <{level = 10 : i32, message = "gsd,gde->gse"}> : () -> ()
    %cst = arith.constant dense<0.000000e+00> : vector<12x8x8xf32>
    %8 = tpu.matmul %5, %7, %cst {dimension_numbers = #tpu.dot_dimension_numbers<[2], [1], [1], [2], [0, 0, 0, 1, 1, 2], [0], [0]>} : vector<12x8x32xf32>, vector<12x32x8xf32>, vector<12x8x8xf32> -> vector<12x8x8xf32>
    "tpu.trace_stop"() : () -> ()
    %c0_6 = arith.constant 0 : index
    %c0_7 = arith.constant 0 : index
    %c0_8 = arith.constant 0 : index
    %c0_9 = arith.constant 0 : index
    %9 = vector.load %arg5[%c0_6, %c0_7, %c0_8, %c0_9] : memref<1x12x1x8xf32, #tpu.memory_space<vmem>>, vector<1x12x1x8xf32>
    %10 = vector.shape_cast %9 : vector<1x12x1x8xf32> to vector<12x1x8xf32>
    %11 = vector.broadcast %10 : vector<12x1x8xf32> to vector<12x8x8xf32>
    %12 = arith.addf %8, %11 : vector<12x8x8xf32>
    %13 = vector.extract_strided_slice %12 {offsets = [0, 0, 0], sizes = [4, 8, 8], strides = [1, 1, 1]} : vector<12x8x8xf32> to vector<4x8x8xf32>
    %cst_10 = arith.constant 0.353553385 : f32
    %14 = vector.broadcast %cst_10 : f32 to vector<4x8x8xf32>
    %15 = arith.mulf %13, %14 : vector<4x8x8xf32>
    %16 = vector.extract_strided_slice %12 {offsets = [4, 0, 0], sizes = [4, 8, 8], strides = [1, 1, 1]} : vector<12x8x8xf32> to vector<4x8x8xf32>
    %17 = vector.extract_strided_slice %12 {offsets = [8, 0, 0], sizes = [4, 8, 8], strides = [1, 1, 1]} : vector<12x8x8xf32> to vector<4x8x8xf32>
    "tpu.trace_start"() <{level = 10 : i32, message = "hqe,hke->hqk"}> : () -> ()
    %cst_11 = arith.constant dense<0.000000e+00> : vector<4x8x8xf32>
    %18 = tpu.matmul %15, %16, %cst_11 {dimension_numbers = #tpu.dot_dimension_numbers<[2], [2], [1], [1], [0, 0, 0, 1, 1, 1], [0], [0]>} : vector<4x8x8xf32>, vector<4x8x8xf32>, vector<4x8x8xf32> -> vector<4x8x8xf32>
    "tpu.trace_stop"() : () -> ()
    %cst_12 = arith.constant dense<0xFF800000> : vector<4x8xf32>
    %19 = vector.multi_reduction <maximumf>, %18, %cst_12 [2] : vector<4x8x8xf32> to vector<4x8xf32>
    %20 = vector.shape_cast %19 : vector<4x8xf32> to vector<4x8x1xf32>
    %21 = vector.broadcast %20 : vector<4x8x1xf32> to vector<4x8x8xf32>
    %22 = arith.subf %18, %21 : vector<4x8x8xf32>
    %23 = math.exp %22 : vector<4x8x8xf32>
    %cst_13 = arith.constant dense<0.000000e+00> : vector<4x8xf32>
    %24 = vector.multi_reduction <add>, %23, %cst_13 [2] : vector<4x8x8xf32> to vector<4x8xf32>
    %25 = vector.shape_cast %24 : vector<4x8xf32> to vector<4x8x1xf32>
    %26 = tpu.reciprocal %25 {approx = true} : vector<4x8x1xf32> -> vector<4x8x1xf32>
    %27 = vector.broadcast %26 : vector<4x8x1xf32> to vector<4x8x8xf32>
    %28 = arith.mulf %23, %27 : vector<4x8x8xf32>
    "tpu.trace_start"() <{level = 10 : i32, message = "hqk,hke->hqe"}> : () -> ()
    %cst_14 = arith.constant dense<0.000000e+00> : vector<4x8x8xf32>
    %29 = tpu.matmul %28, %17, %cst_14 {dimension_numbers = #tpu.dot_dimension_numbers<[2], [1], [1], [2], [0, 0, 0, 1, 1, 2], [0], [0]>} : vector<4x8x8xf32>, vector<4x8x8xf32>, vector<4x8x8xf32> -> vector<4x8x8xf32>
    "tpu.trace_stop"() : () -> ()
    %c0_15 = arith.constant 0 : index
    %c0_16 = arith.constant 0 : index
    %c0_17 = arith.constant 0 : index
    %c0_18 = arith.constant 0 : index
    %30 = vector.load %arg6[%c0_15, %c0_16, %c0_17, %c0_18] : memref<1x4x8x32xf32, #tpu.memory_space<vmem>>, vector<1x4x8x32xf32>
    %31 = vector.shape_cast %30 : vector<1x4x8x32xf32> to vector<4x8x32xf32>
    "tpu.trace_start"() <{level = 10 : i32, message = "hse,hef->hsf"}> : () -> ()
    %cst_19 = arith.constant dense<0.000000e+00> : vector<4x8x32xf32>
    %32 = tpu.matmul %29, %31, %cst_19 {dimension_numbers = #tpu.dot_dimension_numbers<[2], [1], [1], [2], [0, 0, 0, 1, 1, 2], [0], [0]>} : vector<4x8x8xf32>, vector<4x8x32xf32>, vector<4x8x32xf32> -> vector<4x8x32xf32>
    "tpu.trace_stop"() : () -> ()
    %cst_20 = arith.constant dense<0.000000e+00> : vector<8x32xf32>
    %33 = vector.multi_reduction <add>, %32, %cst_20 [0] : vector<4x8x32xf32> to vector<8x32xf32>
    %c0_21 = arith.constant 0 : index
    %c0_22 = arith.constant 0 : index
    %c0_23 = arith.constant 0 : index
    %34 = vector.load %arg7[%c0_21, %c0_22, %c0_23] : memref<1x1x32xf32, #tpu.memory_space<vmem>>, vector<1x1x32xf32>
    %35 = vector.shape_cast %34 : vector<1x1x32xf32> to vector<1x32xf32>
    %36 = vector.broadcast %35 : vector<1x32xf32> to vector<8x32xf32>
    %37 = arith.addf %33, %36 : vector<8x32xf32>
    %38 = arith.addf %3, %37 : vector<8x32xf32>
    %c0_24 = arith.constant 0 : index
    %c0_25 = arith.constant 0 : index
    %c0_26 = arith.constant 0 : index
    %39 = vector.load %arg8[%c0_24, %c0_25, %c0_26] : memref<1x1x32xf32, #tpu.memory_space<vmem>>, vector<1x1x32xf32>
    %40 = vector.shape_cast %39 : vector<1x1x32xf32> to vector<1x32xf32>
    %c0_27 = arith.constant 0 : index
    %c0_28 = arith.constant 0 : index
    %c0_29 = arith.constant 0 : index
    %41 = vector.load %arg9[%c0_27, %c0_28, %c0_29] : memref<1x1x32xf32, #tpu.memory_space<vmem>>, vector<1x1x32xf32>
    %42 = vector.shape_cast %41 : vector<1x1x32xf32> to vector<1x32xf32>
    %cst_30 = arith.constant dense<0.000000e+00> : vector<8xf32>
    %43 = vector.multi_reduction <add>, %38, %cst_30 [1] : vector<8x32xf32> to vector<8xf32>
    %44 = vector.shape_cast %43 : vector<8xf32> to vector<8x1xf32>
    %cst_31 = arith.constant 3.200000e+01 : f32
    %45 = vector.broadcast %cst_31 : f32 to vector<8x1xf32>
    %46 = arith.divf %44, %45 : vector<8x1xf32>
    %47 = vector.broadcast %46 : vector<8x1xf32> to vector<8x32xf32>
    %48 = arith.subf %38, %47 : vector<8x32xf32>
    %49 = arith.mulf %48, %48 : vector<8x32xf32>
    %cst_32 = arith.constant dense<0.000000e+00> : vector<8xf32>
    %50 = vector.multi_reduction <add>, %49, %cst_32 [1] : vector<8x32xf32> to vector<8xf32>
    %51 = vector.shape_cast %50 : vector<8xf32> to vector<8x1xf32>
    %cst_33 = arith.constant 3.200000e+01 : f32
    %52 = vector.broadcast %cst_33 : f32 to vector<8x1xf32>
    %53 = arith.divf %51, %52 : vector<8x1xf32>
    %cst_34 = arith.constant 9.99999974E-6 : f32
    %54 = vector.broadcast %cst_34 : f32 to vector<8x1xf32>
    %55 = arith.addf %53, %54 : vector<8x1xf32>
    %56 = math.rsqrt %55 : vector<8x1xf32>
    %57 = vector.broadcast %56 : vector<8x1xf32> to vector<8x32xf32>
    %58 = arith.mulf %48, %57 : vector<8x32xf32>
    %59 = vector.broadcast %40 : vector<1x32xf32> to vector<8x32xf32>
    %60 = arith.mulf %58, %59 : vector<8x32xf32>
    %61 = vector.broadcast %42 : vector<1x32xf32> to vector<8x32xf32>
    %62 = arith.addf %60, %61 : vector<8x32xf32>
    %c0_35 = arith.constant 0 : index
    %c0_36 = arith.constant 0 : index
    %c0_37 = arith.constant 0 : index
    %63 = vector.load %arg10[%c0_35, %c0_36, %c0_37] : memref<1x32x64xf32, #tpu.memory_space<vmem>>, vector<1x32x64xf32>
    %64 = vector.shape_cast %63 : vector<1x32x64xf32> to vector<32x64xf32>
    %cst_38 = arith.constant dense<0.000000e+00> : vector<8x64xf32>
    %65 = tpu.matmul %62, %64, %cst_38 {dimension_numbers = #tpu.dot_dimension_numbers<[1], [0], [0], [1], [0, 0, 1, 1], [], []>} : vector<8x32xf32>, vector<32x64xf32>, vector<8x64xf32> -> vector<8x64xf32>
    %c0_39 = arith.constant 0 : index
    %c0_40 = arith.constant 0 : index
    %c0_41 = arith.constant 0 : index
    %66 = vector.load %arg11[%c0_39, %c0_40, %c0_41] : memref<1x1x64xf32, #tpu.memory_space<vmem>>, vector<1x1x64xf32>
    %67 = vector.shape_cast %66 : vector<1x1x64xf32> to vector<1x64xf32>
    %68 = vector.broadcast %67 : vector<1x64xf32> to vector<8x64xf32>
    %69 = arith.addf %65, %68 : vector<8x64xf32>
    %cst_42 = arith.constant 0.000000e+00 : f32
    %70 = vector.broadcast %cst_42 : f32 to vector<8x64xf32>
    %71 = arith.maximumf %69, %70 : vector<8x64xf32>
    %c0_43 = arith.constant 0 : index
    %c0_44 = arith.constant 0 : index
    %c0_45 = arith.constant 0 : index
    %72 = vector.load %arg12[%c0_43, %c0_44, %c0_45] : memref<1x64x32xf32, #tpu.memory_space<vmem>>, vector<1x64x32xf32>
    %73 = vector.shape_cast %72 : vector<1x64x32xf32> to vector<64x32xf32>
    %cst_46 = arith.constant dense<0.000000e+00> : vector<8x32xf32>
    %74 = tpu.matmul %71, %73, %cst_46 {dimension_numbers = #tpu.dot_dimension_numbers<[1], [0], [0], [1], [0, 0, 1, 1], [], []>} : vector<8x64xf32>, vector<64x32xf32>, vector<8x32xf32> -> vector<8x32xf32>
    %c0_47 = arith.constant 0 : index
    %c0_48 = arith.constant 0 : index
    %c0_49 = arith.constant 0 : index
    %75 = vector.load %arg13[%c0_47, %c0_48, %c0_49] : memref<1x1x32xf32, #tpu.memory_space<vmem>>, vector<1x1x32xf32>
    %76 = vector.shape_cast %75 : vector<1x1x32xf32> to vector<1x32xf32>
    %77 = vector.broadcast %76 : vector<1x32xf32> to vector<8x32xf32>
    %78 = arith.addf %74, %77 : vector<8x32xf32>
    %79 = arith.addf %62, %78 : vector<8x32xf32>
    %c0_50 = arith.constant 0 : index
    %c0_51 = arith.constant 0 : index
    %c0_52 = arith.constant 0 : index
    %80 = vector.load %arg14[%c0_50, %c0_51, %c0_52] : memref<1x1x32xf32, #tpu.memory_space<vmem>>, vector<1x1x32xf32>
    %81 = vector.shape_cast %80 : vector<1x1x32xf32> to vector<1x32xf32>
    %c0_53 = arith.constant 0 : index
    %c0_54 = arith.constant 0 : index
    %c0_55 = arith.constant 0 : index
    %82 = vector.load %arg15[%c0_53, %c0_54, %c0_55] : memref<1x1x32xf32, #tpu.memory_space<vmem>>, vector<1x1x32xf32>
    %83 = vector.shape_cast %82 : vector<1x1x32xf32> to vector<1x32xf32>
    %cst_56 = arith.constant dense<0.000000e+00> : vector<8xf32>
    %84 = vector.multi_reduction <add>, %79, %cst_56 [1] : vector<8x32xf32> to vector<8xf32>
    %85 = vector.shape_cast %84 : vector<8xf32> to vector<8x1xf32>
    %cst_57 = arith.constant 3.200000e+01 : f32
    %86 = vector.broadcast %cst_57 : f32 to vector<8x1xf32>
    %87 = arith.divf %85, %86 : vector<8x1xf32>
    %88 = vector.broadcast %87 : vector<8x1xf32> to vector<8x32xf32>
    %89 = arith.subf %79, %88 : vector<8x32xf32>
    %90 = arith.mulf %89, %89 : vector<8x32xf32>
    %cst_58 = arith.constant dense<0.000000e+00> : vector<8xf32>
    %91 = vector.multi_reduction <add>, %90, %cst_58 [1] : vector<8x32xf32> to vector<8xf32>
    %92 = vector.shape_cast %91 : vector<8xf32> to vector<8x1xf32>
    %cst_59 = arith.constant 3.200000e+01 : f32
    %93 = vector.broadcast %cst_59 : f32 to vector<8x1xf32>
    %94 = arith.divf %92, %93 : vector<8x1xf32>
    %cst_60 = arith.constant 9.99999974E-6 : f32
    %95 = vector.broadcast %cst_60 : f32 to vector<8x1xf32>
    %96 = arith.addf %94, %95 : vector<8x1xf32>
    %97 = math.rsqrt %96 : vector<8x1xf32>
    %98 = vector.broadcast %97 : vector<8x1xf32> to vector<8x32xf32>
    %99 = arith.mulf %89, %98 : vector<8x32xf32>
    %100 = vector.broadcast %81 : vector<1x32xf32> to vector<8x32xf32>
    %101 = arith.mulf %99, %100 : vector<8x32xf32>
    %102 = vector.broadcast %83 : vector<1x32xf32> to vector<8x32xf32>
    %103 = arith.addf %101, %102 : vector<8x32xf32>
    %c0_61 = arith.constant 0 : index
    %c0_62 = arith.constant 0 : index
    %104 = vector.load %arg17[%c0_61, %c0_62] : memref<8x32xf32, #tpu.memory_space<vmem>>, vector<8x32xf32>
    tpu.vector_store %arg17[%c0_61, %c0_62], %103 {strides = array<i32>} : memref<8x32xf32, #tpu.memory_space<vmem>>, vector<8x32xf32>,
    %c1_i32 = arith.constant 1 : i32
    %105 = arith.cmpi eq, %arg1, %c1_i32 : i32
    %106 = arith.extui %105 : i1 to i32
    %c0_i32_63 = arith.constant 0 : i32
    %107 = arith.cmpi ne, %106, %c0_i32_63 : i32
    scf.if %107 {
      %c0_64 = arith.constant 0 : index
      %c0_65 = arith.constant 0 : index
      %c0_66 = arith.constant 0 : index
      %108 = vector.load %arg16[%c0_64, %c0_65, %c0_66] : memref<1x8x32xf32, #tpu.memory_space<vmem>>, vector<1x8x32xf32>
      %109 = vector.shape_cast %108 : vector<1x8x32xf32> to vector<8x32xf32>
      %110 = vector.shape_cast %103 : vector<8x32xf32> to vector<1x8x32xf32>
      tpu.vector_store %arg16[%c0_64, %c0_65, %c0_66], %110 {strides = array<i32>} : memref<1x8x32xf32, #tpu.memory_space<vmem>>, vector<1x8x32xf32>,
    } else {
    }
    return
  }
  func.func @transform_0(%arg0: i32, %arg1: i32) -> (i32, i32, i32) {
    %c0_i32 = arith.constant 0 : i32
    %c0_i32_0 = arith.constant 0 : i32
    %c0_i32_1 = arith.constant 0 : i32
    return %arg0, %c0_i32, %c0_i32_0 : i32, i32, i32
  }
  func.func @transform_1(%arg0: i32, %arg1: i32) -> (i32, i32, i32) {
    %c0_i32 = arith.constant 0 : i32
    %c0_i32_0 = arith.constant 0 : i32
    %c0_i32_1 = arith.constant 0 : i32
    return %arg0, %c0_i32, %c0_i32_0 : i32, i32, i32
  }
  func.func @transform_2(%arg0: i32, %arg1: i32) -> (i32, i32, i32, i32) {
    %c0_i32 = arith.constant 0 : i32
    %c0_i32_0 = arith.constant 0 : i32
    %c0_i32_1 = arith.constant 0 : i32
    %c0_i32_2 = arith.constant 0 : i32
    return %arg1, %c0_i32, %c0_i32_0, %c0_i32_1 : i32, i32, i32, i32
  }
  func.func @transform_3(%arg0: i32, %arg1: i32) -> (i32, i32, i32, i32) {
    %c0_i32 = arith.constant 0 : i32
    %c0_i32_0 = arith.constant 0 : i32
    %c0_i32_1 = arith.constant 0 : i32
    %c0_i32_2 = arith.constant 0 : i32
    return %arg1, %c0_i32, %c0_i32_0, %c0_i32_1 : i32, i32, i32, i32
  }
  func.func @transform_4(%arg0: i32, %arg1: i32) -> (i32, i32, i32, i32) {
    %c0_i32 = arith.constant 0 : i32
    %c0_i32_0 = arith.constant 0 : i32
    %c0_i32_1 = arith.constant 0 : i32
    %c0_i32_2 = arith.constant 0 : i32
    return %arg1, %c0_i32, %c0_i32_0, %c0_i32_1 : i32, i32, i32, i32
  }
  func.func @transform_5(%arg0: i32, %arg1: i32) -> (i32, i32, i32) {
    %c0_i32 = arith.constant 0 : i32
    %c0_i32_0 = arith.constant 0 : i32
    %c0_i32_1 = arith.constant 0 : i32
    return %arg1, %c0_i32, %c0_i32_0 : i32, i32, i32
  }
  func.func @transform_6(%arg0: i32, %arg1: i32) -> (i32, i32, i32) {
    %c0_i32 = arith.constant 0 : i32
    %c0_i32_0 = arith.constant 0 : i32
    %c0_i32_1 = arith.constant 0 : i32
    return %arg1, %c0_i32, %c0_i32_0 : i32, i32, i32
  }
  func.func @transform_7(%arg0: i32, %arg1: i32) -> (i32, i32, i32) {
    %c0_i32 = arith.constant 0 : i32
    %c0_i32_0 = arith.constant 0 : i32
    %c0_i32_1 = arith.constant 0 : i32
    return %arg1, %c0_i32, %c0_i32_0 : i32, i32, i32
  }
  func.func @transform_8(%arg0: i32, %arg1: i32) -> (i32, i32, i32) {
    %c0_i32 = arith.constant 0 : i32
    %c0_i32_0 = arith.constant 0 : i32
    %c0_i32_1 = arith.constant 0 : i32
    return %arg1, %c0_i32, %c0_i32_0 : i32, i32, i32
  }
  func.func @transform_9(%arg0: i32, %arg1: i32) -> (i32, i32, i32) {
    %c0_i32 = arith.constant 0 : i32
    %c0_i32_0 = arith.constant 0 : i32
    %c0_i32_1 = arith.constant 0 : i32
    return %arg1, %c0_i32, %c0_i32_0 : i32, i32, i32
  }
  func.func @transform_10(%arg0: i32, %arg1: i32) -> (i32, i32, i32) {
    %c0_i32 = arith.constant 0 : i32
    %c0_i32_0 = arith.constant 0 : i32
    %c0_i32_1 = arith.constant 0 : i32
    return %arg1, %c0_i32, %c0_i32_0 : i32, i32, i32
  }
  func.func @transform_11(%arg0: i32, %arg1: i32) -> (i32, i32, i32) {
    %c0_i32 = arith.constant 0 : i32
    %c0_i32_0 = arith.constant 0 : i32
    %c0_i32_1 = arith.constant 0 : i32
    return %arg1, %c0_i32, %c0_i32_0 : i32, i32, i32
  }
  func.func @transform_12(%arg0: i32, %arg1: i32) -> (i32, i32, i32) {
    %c0_i32 = arith.constant 0 : i32
    %c0_i32_0 = arith.constant 0 : i32
    %c0_i32_1 = arith.constant 0 : i32
    return %arg1, %c0_i32, %c0_i32_0 : i32, i32, i32
  }
  func.func @transform_13(%arg0: i32, %arg1: i32) -> (i32, i32, i32) {
    %c0_i32 = arith.constant 0 : i32
    %c0_i32_0 = arith.constant 0 : i32
    %c0_i32_1 = arith.constant 0 : i32
    return %arg1, %c0_i32, %c0_i32_0 : i32, i32, i32
  }
  func.func @transform_14(%arg0: i32, %arg1: i32) -> (i32, i32, i32) {
    %c0_i32 = arith.constant 0 : i32
    %c0_i32_0 = arith.constant 0 : i32
    %c0_i32_1 = arith.constant 0 : i32
    return %arg0, %c0_i32, %c0_i32_0 : i32, i32, i32
  }
}

</mosaic_0001>

<bundles_post_ra>
// kernel: local_transformer_forward.1
= control target key start
LH: loop header
LB: loop body
LE: loop exit
PB: predicated region body
PF: predicated region fallthrough
CT: control target
= control target key end

     0   :  { %s4248_s0 = inlined_call_operand.vmem [shape: f32[2,8,32], index: 0, kind: input, shape index: {}]   ;;  %s4249_s1 = inlined_call_operand.vmem [shape: f32[2,8,32], index: 1, kind: input, shape index: {}]   ;;  %s4250_s2 = inlined_call_operand.vmem [shape: f32[2,12,32,8], index: 2, kind: input, shape index: {}]   ;;  %s4251_s3 = inlined_call_operand.vmem [shape: f32[2,12,1,8], index: 3, kind: input, shape index: {}]   ;;  %s4252_s4 = inlined_call_operand.vmem [shape: f32[2,4,8,32], index: 4, kind: input, shape index: {}]   ;;  %s4253_s5 = inlined_call_operand.vmem [shape: f32[2,1,32], index: 5, kind: input, shape index: {}]   ;;  %s4254_s6 = inlined_call_operand.vmem [shape: f32[2,1,32], index: 6, kind: input, shape index: {}]   ;;  %s4255_s7 = inlined_call_operand.vmem [shape: f32[2,1,32], index: 7, kind: input, shape index: {}]   ;;  %s4256_s8 = inlined_call_operand.vmem [shape: f32[2,32,64], index: 8, kind: input, shape index: {}]   ;;  %s4257_s9 = inlined_call_operand.vmem [shape: f32[2,1,64], index: 9, kind: input, shape index: {}]   ;;  %s4258_s10 = inlined_call_operand.vmem [shape: f32[2,64,32], index: 10, kind: input, shape index: {}]   ;;  %s4259_s11 = inlined_call_operand.vmem [shape: f32[2,1,32], index: 11, kind: input, shape index: {}]   ;;  %s4260_s12 = inlined_call_operand.vmem [shape: f32[2,1,32], index: 12, kind: input, shape index: {}]   ;;  %s4261_s13 = inlined_call_operand.vmem [shape: f32[2,1,32], index: 13, kind: input, shape index: {}]   ;;  %s4262_s14 = inlined_call_operand.hbm [shape: f32[2,8,32], index: 14, kind: output, shape index: {}]  }
   0x1   :  { %4279 = sst [smem:[#allocation20_spill]] %s4248_s0 }
   0x2   :  { %4280 = sst [smem:[#allocation21_spill]] %s4249_s1 }
   0x3   :  { %4281 = sst [smem:[#allocation22_spill]] %s4250_s2 }
   0x4   :  { %4282 = sst [smem:[#allocation23_spill]] %s4251_s3 }
   0x5   :  { %4283 = sst [smem:[#allocation24_spill]] %s4252_s4 }
   0x6   :  { %4284 = sst [smem:[#allocation25_spill]] %s4256_s8 }
   0x7   :  { %4285 = sst [smem:[#allocation26_spill]] %s4260_s12 }
   0x8   :  { %4286 = sst [smem:[#allocation27_spill]] %s4261_s13 }
   0x9   :  { %4287 = sst [smem:[#allocation28_spill]] %s4262_s14 }
   0xa   :  { %19 = vsyncpa [#allocation4], 0 }
   0xb   :  { %21 = vsyncpa [#allocation4 + $0x1], 0  ;;  %s3749_s29 = smov 0   ;;  %s3751_s30 = smov 0  }
   0xc   :  { %s3753_s15 = smov 0   ;;  %s3755_s16 = smov 0  }
   0xd   :  { %s3757_s17 = smov 0   ;;  %s3759_s18 = smov 0  }
   0xe   :  { %s3761_s19 = smov 0   ;;  %s3763_s20 = smov 0  }
   0xf LB: > { %4288 = sst [smem:[#allocation6_spill]] %s3641_s29  ;;  %s3089_s21 = sadd.s32 4294967295, %s3669_s20   ;;  %s3669_s20 = sphi %s3763_s20, %s27_s20   ;;  %s3665_s19 = sphi %s3761_s19, %s4334_s19   ;;  %s3661_s18 = sphi %s3759_s18, %s4333_s18   ;;  %s3657_s17 = sphi %s3757_s17, %s4332_s17   ;;  %s3653_s16 = sphi %s3755_s16, %s4331_s16   ;;  %s3649_s15 = sphi %s3753_s15, %s4330_s15   ;;  %s3645_s30 = sphi %s3751_s30, %s4329_s30   ;;  %s3641_s29 = sphi %s3749_s29, %s4328_s29  }
  0x10   : > { %4289 = sst [smem:[#allocation7_spill]] %s3645_s30  ;;  %s3090_s22 = sadd.s32 4294967294, %s3669_s20  }
  0x11   : > { %4290 = sst [smem:[#allocation8_spill]] %s3649_s15  ;;  %s36_s23 = sadd.s32 1, %s3661_s18 }
  0x12   : > { %4291 = sst [smem:[#allocation9_spill]] %s3653_s16  ;;  %p37_p0 = scmp.ge.s32.totalorder %s36_s23, 2 }
  0x13   : > { %4292 = sst [smem:[#allocation10_spill]] %s3657_s17  ;;  %s39_s24 = sadd.s32 1, %s3665_s19 }
  0x14   : > { %4293 = sst [smem:[#allocation11_spill]] %s3661_s18  ;;  %p420_p1 = scmp.ne.s32.totalorder %s3649_s15, %s3645_s30 }
  0x15   : > { %4294 = sst [smem:[#allocation12_spill]] %s3665_s19  ;;  %p421_p2 = scmp.eq.s32.totalorder %s3089_s21, 3 }
  0x16   : > { %4295 = sst [smem:[#allocation13_spill]] %s3669_s20  ;;  %s4336_s23 = smov (%p37_p0, %s36_s23), 0 }
  0x17   : > { %4296 = sst [smem:[#allocation14_spill]] %s4336_s23  ;;  %s4338_s24 = smov (!%p37_p0, %s39_s24), %s3665_s19 }
  0x18   : > { %p3798_p3 = por %p421_p2, %p420_p1  ;;  %p426_p4 = scmp.ne.s32.totalorder %s3645_s30, %s3641_s29 }
  0x19   : > { %p41_p5 = scmp.ge.s32.totalorder %s4338_s24, 2  ;;  %p427_p6 = scmp.eq.s32.totalorder %s3090_s22, 3 }
  0x1a   : > { %s4297_s25 = scalar_select %p3798_p3, 1, 0 }
  0x1b   : > { %p3093_p7 = scmp.ge.s32.totalorder %s3669_s20, 1  ;;  %p540_p8 = scmp.lt.s32.totalorder %s3669_s20, 5 }
  0x1c   : > { %4298 = sst [smem:[#allocation15_spill]] %s4297_s25  ;;  %s4340_s24 = smov (%p41_p5, %s4338_s24), 0 }
  0x1d   : > { %4299 = sst [smem:[#allocation16_spill]] %s4340_s24  ;;  %p3808_p9 = por %p427_p6, %p426_p4 }
  0x1e   : > { %p541_p10 = pnand %p3093_p7, %p540_p8  ;;  %s407_s27 = ssub.s32 %s3665_s19, %s4340_s24 }
  0x1f   : > { %s4300_s26 = scalar_select %p3808_p9, 1, 0 }
  0x20   : > { %s410_s28 = sadd.s32 1, %s3649_s15  ;;  %p408_p11 = scmp.eq.s32.totalorder %s407_s27, 0 }
  0x21   : > { %4301 = sst [smem:[#allocation17_spill]] %s4300_s26  ;;  %544 = sbr.rel (%p541_p10) target bundleno = 2245 (0x8c5), region = 76 }
  0x22   : > { %s3816_s21 = scalar_select %p408_p11, %s3649_s15, %s410_s28  }
  0x24   : > { %4302 = sst [smem:[#allocation18_spill]] %s3816_s21 }
  0x26   : > { %s4267_s22 = sand.u32 1, %s3645_s30   ;;  %p634_p12 = scmp.lt.s32.totalorder %s3657_s17, 1 }
  0x27   : > { %s3822_s23 = sshll.u32 %s4267_s22, 3  ;;  %p642_p13 = scmp.lt.s32.totalorder %s3653_s16, 1 }
  0x28   : > { %s635_s18 = scalar_select %p634_p12, %s3657_s17, 1 }
  0x29   : > { %s3827_s26 = scalar_select %p642_p13, %s3653_s16, 1 }
  0x2a   : > { %s3095_s27 = sshll.u32 %s635_s18, 3  ;;  %s4303_s0 = sld [smem:[#allocation20_spill]] }
  0x2b   : > { %s4304_s1 = sld [smem:[#allocation21_spill]]  ;;  %s3482_s29 = smul.u32 384, %s3827_s26 }
  0x2c   : > { %s3159_s20 = sshll.u32 %s3827_s26, 5  ;;  %s3483_s14 = smul.u32 12, %s3827_s26 }
  0x2d   : > { %s4305_s4 = sld [smem:[#allocation24_spill]]  ;;  %s672_s21 = scalar_lea.vmem %s4257_s9, %s3827_s26 }
  0x2e   : > { %s4307_s2 = sld [smem:[#allocation22_spill]]  ;;  %s3161_s22 = sshll.u32 %s3827_s26, 6 }
  0x2f   : > { %s4308_s3 = sld [smem:[#allocation23_spill]] }
  0x30   : > { %s637_s19 = scalar_lea.vmem %s4303_s0, %s3095_s27  ;;  %s4309_s8 = sld [smem:[#allocation25_spill]] }
  0x31   : > { %s641_s15 = scalar_lea.vmem %s4304_s1, %s3095_s27  ;;  %s4310_s30 = sld [smem:[#allocation26_spill]] }
  0x32   : > { %s633_s0 = scalar_lea.vmem [#allocation3], %s3822_s23  ;;  %s4312_s28 = sld [smem:[#allocation9_spill]] }
  0x33   : > { %s3841_s17 = scalar_lea.vmem %s4305_s4, %s3159_s20  ;;  %s680_s4 = scalar_lea.vmem %s4259_s11, %s3827_s26 }
  0x34   : > { %4306 = sst [smem:[#allocation19_spill]] %s3841_s17  ;;  %s3846_s24 = scalar_lea.vmem %s4307_s2, %s3482_s29 }
  0x35   : > { %s3855_s1 = scalar_lea.vmem %s4308_s3, %s3483_s14  ;;  %s3878_s2 = scalar_lea.vmem %s4258_s10, %s3161_s22 }
  0x36   : > { %s3868_s18 = scalar_lea.vmem %s4309_s8, %s3159_s20  ;;  %s4311_s3 = sld [smem:[#allocation27_spill]] }
  0x37   : > { %s683_s16 = scalar_lea.vmem %s4310_s30, %s3827_s26 }
  0x38   : > { %p3104_p0 = scmp.ne.s32.totalorder %s4312_s28, 0 }
  0x3a   : > { %690 = sbr.rel (%p3104_p0) target bundleno = 68 (0x44), region = 80 }
  0x3c   : > { %s686_s8 = scalar_lea.vmem %s4311_s3, %s3827_s26 }
  0x3f   : > { %v691_v0 = vld [vmem:[%s637_s19] sm:$0xff]  ;;  %vm694_vm0 = vcmask 261120  }
  0x40   : > { %v692_v1 = vld [vmem:[%s641_s15] sm:$0xff] }
  0x41   : > { %v693_v2 = vadd.f32 %v692_v1, %v691_v0 }
  0x43   : > { %695 = vst.msk [vmem:[#allocation2] sm:$0xff] %vm694_vm0, %v693_v2 }
  0x44 PF: > { %v700_v3 = vld [vmem:[%s3846_s24 + $0x18] sm:$0xff]  ;;  %v3671_v5 = vmov 0.0   ;;  %v699_v6 = vld [vmem:[%s3846_s24 + $0x10] sm:$0xff]  ;;  %v698_v8 = vld [vmem:[%s3846_s24 + $0x8] sm:$0xff]  ;;  %vm829_vm1 = vcmask 261120   ;;  %vm3672_vm2 = vmmov 0   ;;  %s4314_s17 = scalar_lea.vmem %s4253_s5, %s3827_s26  ;;  %s4315_s30 = scalar_lea.vmem %s4254_s6, %s3827_s26 }
  0x45   : > { %v704_v4 = vld [vmem:[%s3846_s24 + $0x38] sm:$0xff]  ;;  %3260 = vmatprep.subr.mxu0 %v3671_v5  ;;  %3271 = vmatprep.subr.mxu1 %v3671_v5  ;;  %v703_v7 = vld [vmem:[%s3846_s24 + $0x30] sm:$0xff]  ;;  %v702_v9 = vld [vmem:[%s3846_s24 + $0x28] sm:$0xff]  ;;  %vm1677_vm3 = vcmask 64512   ;;  %s4313_s3 = sld [smem:[#allocation19_spill]]  ;;  %s4316_s14 = scalar_lea.vmem %s4255_s7, %s3827_s26  ;;  %vm2760_vm4 = vcmask 523264  }
  0x46   : > { %3261 = vmatpush3.msra.mxu0 %v700_v3  ;;  %3272 = vmatpush3.msra.mxu1 %v704_v4  ;;  %v697_v10 = vld [vmem:[%s3846_s24] sm:$0xff]  ;;  %v708_v13 = vld [vmem:[%s3846_s24 + $0x58] sm:$0xff]  ;;  %v707_v15 = vld [vmem:[%s3846_s24 + $0x50] sm:$0xff] }
  0x47   : > { %3262 = vmatprep.subr.mxu0 %v3671_v5  ;;  %3273 = vmatprep.subr.mxu1 %v3671_v5  ;;  %v701_v11 = vld [vmem:[%s3846_s24 + $0x20] sm:$0xff]  ;;  %v712_v14 = vld [vmem:[%s3846_s24 + $0x78] sm:$0xff]  ;;  %v711_v16 = vld [vmem:[%s3846_s24 + $0x70] sm:$0xff] }
  0x48   : > { %3263 = vmatpush3.msra.mxu0 %v699_v6  ;;  %3274 = vmatpush3.msra.mxu1 %v703_v7  ;;  %v706_v17 = vld [vmem:[%s3846_s24 + $0x48] sm:$0xff]  ;;  %v705_v19 = vld [vmem:[%s3846_s24 + $0x40] sm:$0xff]  ;;  %v716_v21 = vld [vmem:[%s3846_s24 + $0x98] sm:$0xff] }
  0x49   : > { %3264 = vmatprep.subr.mxu0 %v3671_v5  ;;  %3275 = vmatprep.subr.mxu1 %v3671_v5  ;;  %v710_v18 = vld [vmem:[%s3846_s24 + $0x68] sm:$0xff]  ;;  %v709_v20 = vld [vmem:[%s3846_s24 + $0x60] sm:$0xff]  ;;  %v720_v22 = vld [vmem:[%s3846_s24 + $0xb8] sm:$0xff] }
  0x4a   : > { %3265 = vmatpush3.msra.mxu0 %v698_v8  ;;  %3276 = vmatpush3.msra.mxu1 %v702_v9  ;;  %v3908_v12 = vld [vmem:[#allocation2] sm:$0xff]  ;;  %v715_v23 = vld [vmem:[%s3846_s24 + $0x90] sm:$0xff]  ;;  %v714_v25 = vld [vmem:[%s3846_s24 + $0x88] sm:$0xff] }
  0x4b   : > { %3266 = vmatprep.subr.mxu0 %v3671_v5  ;;  %3277 = vmatprep.subr.mxu1 %v3671_v5  ;;  %v719_v24 = vld [vmem:[%s3846_s24 + $0xb0] sm:$0xff]  ;;  %v718_v26 = vld [vmem:[%s3846_s24 + $0xa8] sm:$0xff]  ;;  %v713_v27 = vld [vmem:[%s3846_s24 + $0x80] sm:$0xff] }
  0x4c   : > { %3267 = vmatpush3.msra.mxu0 %v697_v10  ;;  %3268 = vmatprep.mubr.msk.f32.mxu0 %vm3672_vm2, %v3671_v5  ;;  %v717_v28 = vld [vmem:[%s3846_s24 + $0xa0] sm:$0xff]  ;;  %v724_v29 = vld [vmem:[%s3846_s24 + $0xd8] sm:$0xff]  ;;  %v723_v31 = vld [vmem:[%s3846_s24 + $0xd0] sm:$0xff] }
  0x4d   : > { %3278 = vmatpush3.msra.mxu1 %v701_v11  ;;  %3269 = vmatmul.mubr.msk.f32.vlgmr.msra.gmra.mxu0 %vm829_vm1, %v3908_v12  ;;  %v728_v30 = vld [vmem:[%s3846_s24 + $0xf8] sm:$0xff]  ;;  %v727_v32 = vld [vmem:[%s3846_s24 + $0xf0] sm:$0xff]  ;;  %v722_v33 = vld [vmem:[%s3846_s24 + $0xc8] sm:$0xff] }
  0x4e   : > { %3279 = vmatprep.mubr.msk.f32.mxu1 %vm3672_vm2, %v3671_v5  ;;  %3282 = vmatprep.subr.mxu0 %v3671_v5  ;;  %v726_v34 = vld [vmem:[%s3846_s24 + $0xe8] sm:$0xff]  ;;  %v721_v35 = vld [vmem:[%s3846_s24 + $0xc0] sm:$0xff]  ;;  %v732_v37 = vld [vmem:[%s3846_s24 + $0x118] sm:$0xff] }
  0x4f   : > { %3293 = vmatprep.subr.mxu1 %v3671_v5  ;;  %3280 = vmatmul.mubr.msk.f32.vlgmr.msra.gmra.mxu1 %vm829_vm1, %v3908_v12  ;;  %v725_v36 = vld [vmem:[%s3846_s24 + $0xe0] sm:$0xff]  ;;  %v731_v38 = vld [vmem:[%s3846_s24 + $0x110] sm:$0xff]  ;;  %v730_v39 = vld [vmem:[%s3846_s24 + $0x108] sm:$0xff] }
  0x50   : > { %3283 = vmatpush3.msra.mxu0 %v708_v13  ;;  %3294 = vmatpush3.msra.mxu1 %v712_v14  ;;  %v729_v40 = vld [vmem:[%s3846_s24 + $0x100] sm:$0xff]  ;;  %v740_v41 = vld [vmem:[%s3846_s24 + $0x158] sm:$0xff]  ;;  %v739_v43 = vld [vmem:[%s3846_s24 + $0x150] sm:$0xff] }
  0x51   : > { %3284 = vmatprep.subr.mxu0 %v3671_v5  ;;  %3295 = vmatprep.subr.mxu1 %v3671_v5  ;;  %v736_v42 = vld [vmem:[%s3846_s24 + $0x138] sm:$0xff]  ;;  %v735_v44 = vld [vmem:[%s3846_s24 + $0x130] sm:$0xff]  ;;  %v738_v45 = vld [vmem:[%s3846_s24 + $0x148] sm:$0xff] }
  0x52   : > { %3285 = vmatpush3.msra.mxu0 %v707_v15  ;;  %3296 = vmatpush3.msra.mxu1 %v711_v16  ;;  %v734_v46 = vld [vmem:[%s3846_s24 + $0x128] sm:$0xff]  ;;  %v737_v47 = vld [vmem:[%s3846_s24 + $0x140] sm:$0xff]  ;;  %v744_v49 = vld [vmem:[%s3846_s24 + $0x178] sm:$0xff] }
  0x53   : > { %3286 = vmatprep.subr.mxu0 %v3671_v5  ;;  %3297 = vmatprep.subr.mxu1 %v3671_v5  ;;  %v733_v48 = vld [vmem:[%s3846_s24 + $0x120] sm:$0xff]  ;;  %v743_v50 = vld [vmem:[%s3846_s24 + $0x170] sm:$0xff]  ;;  %v742_v51 = vld [vmem:[%s3846_s24 + $0x168] sm:$0xff] }
  0x54   : > { %3287 = vmatpush3.msra.mxu0 %v706_v17  ;;  %3298 = vmatpush3.msra.mxu1 %v710_v18  ;;  %v741_v52 = vld [vmem:[%s3846_s24 + $0x160] sm:$0xff] }
  0x55   : > { %3288 = vmatprep.subr.mxu0 %v3671_v5  ;;  %3299 = vmatprep.subr.mxu1 %v3671_v5  ;;  %v3105_v61 = vld [vmem:[%s3855_s1] ss:$0 sm:$0xff]  ;;  %v3109_v62 = vld [vmem:[%s3855_s1 + $0x4] ss:$0 sm:$0xff]  ;;  %v3110_v1 = vld [vmem:[%s3855_s1 + $0x5] ss:$0 sm:$0xff] }
  0x56   : > { %3289 = vmatpush3.msra.mxu0 %v705_v19  ;;  %3290 = vmatprep.mubr.msk.f32.mxu0 %vm3672_vm2, %v3671_v5  ;;  %v3106_v2 = vld [vmem:[%s3855_s1 + $0x1] ss:$0 sm:$0xff]  ;;  %v3107_v13 = vld [vmem:[%s3855_s1 + $0x2] ss:$0 sm:$0xff]  ;;  %v3108_v14 = vld [vmem:[%s3855_s1 + $0x3] ss:$0 sm:$0xff] }
  0x57   : > { %3300 = vmatpush3.msra.mxu1 %v709_v20  ;;  %3291 = vmatmul.mubr.msk.f32.vlgmr.msra.gmra.mxu0 %vm829_vm1, %v3908_v12  ;;  %v3111_v15 = vld [vmem:[%s3855_s1 + $0x6] ss:$0 sm:$0xff]  ;;  %v3112_v16 = vld [vmem:[%s3855_s1 + $0x7] ss:$0 sm:$0xff] }
  0x58   : > { %3301 = vmatprep.mubr.msk.f32.mxu1 %vm3672_vm2, %v3671_v5  ;;  %3304 = vmatprep.subr.mxu0 %v3671_v5 }
  0x59   : > { %3315 = vmatprep.subr.mxu1 %v3671_v5  ;;  %3302 = vmatmul.mubr.msk.f32.vlgmr.msra.gmra.mxu1 %vm829_vm1, %v3908_v12 }
  0x5a   : > { %3305 = vmatpush3.msra.mxu0 %v716_v21  ;;  %3316 = vmatpush3.msra.mxu1 %v720_v22 }
  0x5b   : > { %3306 = vmatprep.subr.mxu0 %v3671_v5  ;;  %3317 = vmatprep.subr.mxu1 %v3671_v5 }
  0x5c   : > { %3307 = vmatpush3.msra.mxu0 %v715_v23  ;;  %3318 = vmatpush3.msra.mxu1 %v719_v24 }
  0x5d   : > { %3308 = vmatprep.subr.mxu0 %v3671_v5  ;;  %3319 = vmatprep.subr.mxu1 %v3671_v5 }
  0x5e   : > { %3309 = vmatpush3.msra.mxu0 %v714_v25  ;;  %3320 = vmatpush3.msra.mxu1 %v718_v26 }
  0x5f   : > { %3310 = vmatprep.subr.mxu0 %v3671_v5  ;;  %3321 = vmatprep.subr.mxu1 %v3671_v5 }
  0x60   : > { %3311 = vmatpush3.msra.mxu0 %v713_v27  ;;  %3312 = vmatprep.mubr.msk.f32.mxu0 %vm3672_vm2, %v3671_v5  ;;  %v3113_v27 = vld [vmem:[%s3855_s1 + $0x8] ss:$0 sm:$0xff] }
  0x61   : > { %3322 = vmatpush3.msra.mxu1 %v717_v28  ;;  %3313 = vmatmul.mubr.msk.f32.vlgmr.msra.gmra.mxu0 %vm829_vm1, %v3908_v12 }
  0x62   : > { %3323 = vmatprep.mubr.msk.f32.mxu1 %vm3672_vm2, %v3671_v5  ;;  %3326 = vmatprep.subr.mxu0 %v3671_v5 }
  0x63   : > { %3337 = vmatprep.subr.mxu1 %v3671_v5  ;;  %3324 = vmatmul.mubr.msk.f32.vlgmr.msra.gmra.mxu1 %vm829_vm1, %v3908_v12 }
  0x64   : > { %3327 = vmatpush3.msra.mxu0 %v724_v29  ;;  %3338 = vmatpush3.msra.mxu1 %v728_v30 }
  0x65   : > { %3328 = vmatprep.subr.mxu0 %v3671_v5  ;;  %3339 = vmatprep.subr.mxu1 %v3671_v5 }
  0x66   : > { %3329 = vmatpush3.msra.mxu0 %v723_v31  ;;  %3340 = vmatpush3.msra.mxu1 %v727_v32  ;;  %v3114_v32 = vld [vmem:[%s3855_s1 + $0x9] ss:$0 sm:$0xff] }
  0x67   : > { %3330 = vmatprep.subr.mxu0 %v3671_v5  ;;  %3341 = vmatprep.subr.mxu1 %v3671_v5 }
  0x68   : > { %3331 = vmatpush3.msra.mxu0 %v722_v33  ;;  %3342 = vmatpush3.msra.mxu1 %v726_v34 }
  0x69   : > { %3332 = vmatprep.subr.mxu0 %v3671_v5  ;;  %3343 = vmatprep.subr.mxu1 %v3671_v5 }
  0x6a   : > { %3333 = vmatpush3.msra.mxu0 %v721_v35  ;;  %3334 = vmatprep.mubr.msk.f32.mxu0 %vm3672_vm2, %v3671_v5 }
  0x6b   : > { %3344 = vmatpush3.msra.mxu1 %v725_v36  ;;  %3345 = vmatprep.mubr.msk.f32.mxu1 %vm3672_vm2, %v3671_v5 }
  0x6c   : > { %3335 = vmatmul.mubr.msk.f32.vlgmr.msra.gmra.mxu0 %vm829_vm1, %v3908_v12  ;;  %3346 = vmatmul.mubr.msk.f32.vlgmr.msra.gmra.mxu1 %vm829_vm1, %v3908_v12 }
  0x6d   : > { %3348 = vmatprep.subr.mxu0 %v3671_v5  ;;  %3356 = vmatprep.mubr.msk.f32.mxu0 %vm3672_vm2, %v3671_v5 }
  0x6e   : > { %3359 = vmatprep.subr.mxu1 %v3671_v5  ;;  %3367 = vmatprep.mubr.msk.f32.mxu1 %vm3672_vm2, %v3671_v5 }
  0x6f   : > { %3349 = vmatpush3.msra.mxu0 %v732_v37  ;;  %3360 = vmatpush3.msra.mxu1 %v736_v42 }
  0x70   : > { %3350 = vmatprep.subr.mxu0 %v3671_v5  ;;  %3361 = vmatprep.subr.mxu1 %v3671_v5 }
  0x71   : > { %3351 = vmatpush3.msra.mxu0 %v731_v38  ;;  %3362 = vmatpush3.msra.mxu1 %v735_v44 }
  0x72   : > { %3352 = vmatprep.subr.mxu0 %v3671_v5  ;;  %3363 = vmatprep.subr.mxu1 %v3671_v5 }
  0x73   : > { %3353 = vmatpush3.msra.mxu0 %v730_v39  ;;  %3364 = vmatpush3.msra.mxu1 %v734_v46 }
  0x74   : > { %3354 = vmatprep.subr.mxu0 %v3671_v5  ;;  %3365 = vmatprep.subr.mxu1 %v3671_v5 }
  0x75   : > { %3355 = vmatpush3.msra.mxu0 %v729_v40  ;;  %3366 = vmatpush3.msra.mxu1 %v733_v48 }
  0x76   : > { %3357 = vmatmul.mubr.msk.f32.vlgmr.msra.gmra.mxu0 %vm829_vm1, %v3908_v12  ;;  %3370 = vmatprep.subr.mxu0 %v3671_v5 }
  0x77   : > { %3371 = vmatpush3.msra.mxu0 %v740_v41  ;;  %3378 = vmatprep.mubr.msk.f32.mxu0 %vm3672_vm2, %v3671_v5 }
  0x78   : > { %3372 = vmatprep.subr.mxu0 %v3671_v5  ;;  %3381 = vmatprep.subr.mxu1 %v3671_v5 }
  0x79   : > { %3373 = vmatpush3.msra.mxu0 %v739_v43  ;;  %3368 = vmatmul.mubr.msk.f32.vlgmr.msra.gmra.mxu1 %vm829_vm1, %v3908_v12 }
  0x7a   : > { %3374 = vmatprep.subr.mxu0 %v3671_v5  ;;  %3382 = vmatpush3.msra.mxu1 %v744_v49 }
  0x7b   : > { %3375 = vmatpush3.msra.mxu0 %v738_v45  ;;  %3389 = vmatprep.mubr.msk.f32.mxu1 %vm3672_vm2, %v3671_v5 }
  0x7c   : > { %3376 = vmatprep.subr.mxu0 %v3671_v5  ;;  %3383 = vmatprep.subr.mxu1 %v3671_v5 }
  0x7d   : > { %3377 = vmatpush3.msra.mxu0 %v737_v47  ;;  %3384 = vmatpush3.msra.mxu1 %v743_v50 }
  0x7e   : > { %3379 = vmatmul.mubr.msk.f32.vlgmr.msra.gmra.mxu0 %vm829_vm1, %v3908_v12  ;;  %3392 = vmatprep.subr.mxu0 %v3671_v5 }
  0x7f   : > { %3394 = vmatprep.mubr.msk.f32.mxu0 %vm3672_vm2, %v3671_v5  ;;  %3385 = vmatprep.subr.mxu1 %v3671_v5 }
  0x80   : > { %3386 = vmatpush3.msra.mxu1 %v742_v51 }
  0x81   : > { %3387 = vmatprep.subr.mxu1 %v3671_v5 }
  0x82   : > { %3388 = vmatpush3.msra.mxu1 %v741_v52 }
  0x83   : > { %3390 = vmatmul.mubr.msk.f32.vlgmr.msra.gmra.mxu1 %vm829_vm1, %v3908_v12  ;;  %3407 = vmatprep.subr.mxu1 %v3671_v5 }
  0x84   : > { %3409 = vmatprep.mubr.msk.f32.mxu1 %vm3672_vm2, %v3671_v5 }
 0x10d   : > { %v899_v53 = vpop.f32.mrf.mxu0 }
 0x10e   : > { %v900_v63 = vadd.f32 %v3105_v61, %v899_v53 }
 0x10f   : > { %v3270_v54 = vpop.f32.mrf.mxu0  ;;  %v969_v55 = vpop.f32.mrf.mxu1 }
 0x110   : > { %v1673_v8 = vmul.f32 0.35355338, %v900_v63  ;;  %v970_v9 = vadd.f32 %v3106_v2, %v969_v55 }
 0x111   : > { %v3281_v56 = vpop.f32.mrf.mxu1 }
 0x112   : > { %v1674_v11 = vmul.f32 0.35355338, %v970_v9 }
 0x117   : > { %v1039_v57 = vpop.f32.mrf.mxu0 }
 0x118   : > { %v1040_v17 = vadd.f32 %v3107_v13, %v1039_v57 }
 0x119   : > { %v3292_v58 = vpop.f32.mrf.mxu0  ;;  %v1109_v59 = vpop.f32.mrf.mxu1 }
 0x11a   : > { %v1110_v18 = vadd.f32 %v3108_v14, %v1109_v59  ;;  %v1675_v25 = vmul.f32 0.35355338, %v1040_v17  ;;  %v3116_v17 = vld [vmem:[%s3855_s1 + $0xb] ss:$0 sm:$0xff] }
 0x11b   : > { %v3303_v60 = vpop.f32.mrf.mxu1 }
 0x11c   : > { %v1676_v26 = vmul.f32 0.35355338, %v1110_v18 }
 0x121   : > { %v1179_v0 = vpop.f32.mrf.mxu0 }
 0x122   : > { %v1180_v3 = vadd.f32 %v3109_v62, %v1179_v0 }
 0x123   : > { %v3314_v4 = vpop.f32.mrf.mxu0  ;;  %v1249_v6 = vpop.f32.mrf.mxu1 }
 0x124   : > { %v1250_v7 = vadd.f32 %v3110_v1, %v1249_v6  ;;  %3393 = vmatpush3.xpose.msk.msra.mxu0 %vm1677_vm3, %v1180_v3 }
 0x125   : > { %v3325_v10 = vpop.f32.mrf.mxu1  ;;  %3397 = vmatprep.subr.mxu0 %v3671_v5 }
 0x127   : > { %3395 = vmatmul.mubr.msk.f32.vlgmr.msra.gmra.mxu0 %vm1677_vm3, %v1673_v8 }
 0x128   : > { %3398 = vmatpush3.xpose.msk.msra.mxu0 %vm1677_vm3, %v1250_v7  ;;  %3399 = vmatprep.mubr.msk.f32.mxu0 %vm3672_vm2, %v3671_v5 }
 0x129   : > { %3402 = vmatprep.subr.mxu0 %v3671_v5 }
 0x12b   : > { %3400 = vmatmul.mubr.msk.f32.vlgmr.msra.gmra.mxu0 %vm1677_vm3, %v1674_v11  ;;  %v3115_v11 = vld [vmem:[%s3855_s1 + $0xa] ss:$0 sm:$0xff] }
 0x12c   : > { %v1319_v19 = vpop.f32.mrf.mxu0  ;;  %v1389_v20 = vpop.f32.mrf.mxu1  ;;  %3404 = vmatprep.mubr.msk.f32.mxu0 %vm3672_vm2, %v3671_v5 }
 0x12d   : > { %v1320_v21 = vadd.f32 %v3111_v15, %v1319_v19  ;;  %v1390_v22 = vadd.f32 %v3112_v16, %v1389_v20 }
 0x12e   : > { %v3336_v23 = vpop.f32.mrf.mxu0  ;;  %v3347_v24 = vpop.f32.mrf.mxu1 }
 0x12f   : > { %3403 = vmatpush3.xpose.msk.msra.mxu0 %vm1677_vm3, %v1320_v21  ;;  %3408 = vmatpush3.xpose.msk.msra.mxu1 %vm1677_vm3, %v1390_v22 }
 0x130   : > { %3412 = vmatprep.subr.mxu0 %v3671_v5  ;;  %3417 = vmatprep.subr.mxu1 %v3671_v5 }
 0x132   : > { %3405 = vmatmul.mubr.msk.f32.vlgmr.msra.gmra.mxu0 %vm1677_vm3, %v1675_v25  ;;  %3410 = vmatmul.mubr.msk.f32.vlgmr.msra.gmra.mxu1 %vm1677_vm3, %v1676_v26  ;;  %v2318_v25 = vld [vmem:[%s4313_s3] sm:$0xff]  ;;  %v2319_v26 = vld [vmem:[%s4313_s3 + $0x8] sm:$0xff] }
 0x133   : > { %3414 = vmatprep.mubr.msk.f32.mxu0 %vm3672_vm2, %v3671_v5  ;;  %3419 = vmatprep.mubr.msk.f32.mxu1 %vm3672_vm2, %v3671_v5 }
 0x136   : > { %v1459_v28 = vpop.f32.mrf.mxu0 }
 0x137   : > { %v1460_v29 = vadd.f32 %v3113_v27, %v1459_v28  ;;  %v2320_v27 = vld [vmem:[%s4313_s3 + $0x10] sm:$0xff] }
 0x138   : > { %v3358_v30 = vpop.f32.mrf.mxu0 }
 0x139   : > { %3413 = vmatpush3.msra.mxu0 %v1460_v29  ;;  %v1529_v34 = vpop.f32.mrf.mxu1  ;;  %v2321_v30 = vld [vmem:[%s4313_s3 + $0x18] sm:$0xff]  ;;  %s4319_s3 = sld [smem:[#allocation9_spill]] }
 0x13a   : > { %3422 = vmatprep.subr.mxu0 %v3671_v5  ;;  %v1530_v35 = vadd.f32 %v3114_v32, %v1529_v34 }
 0x13b   : > { %v3369_v36 = vpop.f32.mrf.mxu1 }
 0x13c   : > { %3418 = vmatpush3.msra.mxu1 %v1530_v35 }
 0x13d   : > { %3427 = vmatprep.subr.mxu1 %v3671_v5 }
 0x13e   : > { %v4076_v31 = vpop.f32.mrf.mxu0 }
 0x13f   : > { %v1600_v16 = vadd.f32 %v3115_v11, %v4076_v31  ;;  %p3154_p1 = scmp.ne.s32.totalorder %s4319_s3, 1 }
 0x140   : > { %v3380_v33 = vpop.f32.mrf.mxu0 }
 0x143   : > { %v4080_v37 = vpop.f32.mrf.mxu1 }
 0x144   : > { %v1670_v20 = vadd.f32 %v3116_v17, %v4080_v37  ;;  %v2746_v17 = vld [vmem:[%s3878_s2 + $0x8] sm:$0xff] }
 0x145   : > { %v3391_v38 = vpop.f32.mrf.mxu1 }
 0x1e7   : > { %v1750_v39 = vpop.f32.mrf.mxu0 }
 0x1e8   : > { %v1982_v40 = vsel %vm1677_vm3, %v1750_v39, -inf }
 0x1e9   : > { %1983 = vmax.xlane.f32.xlu0 %v1982_v40  ;;  %v3396_v41 = vpop.f32.mrf.mxu0 }
 0x1eb   : > { %v1826_v42 = vpop.f32.mrf.mxu0 }
 0x1ec   : > { %v1985_v43 = vsel %vm1677_vm3, %v1826_v42, -inf }
 0x1ed   : > { %1986 = vmax.xlane.f32.xlu0 %v1985_v43  ;;  %v3401_v44 = vpop.f32.mrf.mxu0 }
 0x1f2   : > { %v1902_v45 = vpop.f32.mrf.mxu0  ;;  %v1978_v46 = vpop.f32.mrf.mxu1 }
 0x1f3   : > { %v1988_v47 = vsel %vm1677_vm3, %v1902_v45, -inf  ;;  %v1991_v50 = vsel %vm1677_vm3, %v1978_v46, -inf }
 0x1f4   : > { %v3411_v48 = vpop.f32.mrf.mxu1  ;;  %1989 = vmax.xlane.f32.xlu1 %v1988_v47  ;;  %v3406_v49 = vpop.f32.mrf.mxu0 }
 0x1f8   : > { %1992 = vmax.xlane.f32.xlu1 %v1991_v50  ;;  %v3145_v50 = vld [vmem:[%s4314_s17] ss:$0 sm:$0xff] }
 0x272   : > { %v1984_v51 = vpop.xlane.xlu0 %1983 }
 0x273   : > { %v1994_v52 = vsub.f32 %v1750_v39, %v1984_v51 }
 0x275   : > { %v1998_v53 = vmul.f32 1.442695, %v1994_v52 }
 0x276   : > { %v1987_v54 = vpop.xlane.xlu0 %1986 }
 0x277   : > { %3557 = vpow2.f32 %v1998_v53  ;;  %v1995_v55 = vsub.f32 %v1826_v42, %v1987_v54 }
 0x279   : > { %v2000_v56 = vmul.f32 1.442695, %v1995_v55 }
 0x27b   : > { %3559 = vpow2.f32 %v2000_v56 }
 0x27d   : > { %v1990_v57 = vpop.xlane.xlu1 %1989 }
 0x27e   : > { %v1996_v58 = vsub.f32 %v1902_v45, %v1990_v57 }
 0x280   : > { %v2002_v59 = vmul.f32 1.442695, %v1996_v58 }
 0x281   : > { %v1993_v60 = vpop.xlane.xlu1 %1992 }
 0x282   : > { %3561 = vpow2.f32 %v2002_v59  ;;  %v1997_v61 = vsub.f32 %v1978_v46, %v1993_v60 }
 0x284   : > { %v3558_v62 = vpop.eup %3557  ;;  %v2004_v63 = vmul.f32 1.442695, %v1997_v61  ;;  %v2663_v61 = vld [vmem:[%s3868_s18 + $0x18] sm:$0xff] }
 0x285   : > { %v2006_v0 = vsel %vm1677_vm3, %v3558_v62, 0.0 }
 0x286   : > { %3563 = vpow2.f32 %v2004_v63  ;;  %2007 = vadd.xlane.f32.xlu0 %v2006_v0  ;;  %v2660_v63 = vld [vmem:[%s3868_s18] sm:$0xff]  ;;  %v2752_v0 = vld [vmem:[%s3878_s2 + $0x38] sm:$0xff] }
 0x288   : > { %v3560_v1 = vpop.eup %3559 }
 0x289   : > { %v2009_v2 = vsel %vm1677_vm3, %v3560_v1, 0.0 }
 0x28a   : > { %2010 = vadd.xlane.f32.xlu1 %v2009_v2  ;;  %v2750_v2 = vld [vmem:[%s3878_s2 + $0x28] sm:$0xff] }
 0x28f   : > { %v3562_v3 = vpop.eup %3561 }
 0x290   : > { %v2012_v4 = vsel %vm1677_vm3, %v3562_v3, 0.0 }
 0x291   : > { %2013 = vadd.xlane.f32.xlu0 %v2012_v4  ;;  %v2748_v4 = vld [vmem:[%s3878_s2 + $0x18] sm:$0xff] }
 0x293   : > { %v3564_v6 = vpop.eup %3563 }
 0x294   : > { %v2015_v7 = vsel %vm1677_vm3, %v3564_v6, 0.0 }
 0x295   : > { %2016 = vadd.xlane.f32.xlu1 %v2015_v7 }
 0x30f   : > { %v2008_v8 = vpop.xlane.xlu0 %2007 }
 0x310   : > { %3565 = vrcp.f32 %v2008_v8 }
 0x313   : > { %v2011_v9 = vpop.xlane.xlu1 %2010 }
 0x314   : > { %3567 = vrcp.f32 %v2011_v9 }
 0x31a   : > { %v2014_v10 = vpop.xlane.xlu0 %2013 }
 0x31b   : > { %3569 = vrcp.f32 %v2014_v10  ;;  %v3146_v10 = vld [vmem:[%s4315_s30] ss:$0 sm:$0xff] }
 0x31d   : > { %v3566_v13 = vpop.eup %3565 }
 0x31e   : > { %v2017_v14 = vpop.xlane.xlu1 %2016  ;;  %v2022_v15 = vmul.f32 %v3566_v13, %v3558_v62  ;;  %v2661_v62 = vld [vmem:[%s3868_s18 + $0x8] sm:$0xff]  ;;  %v3147_v13 = vld [vmem:[%s4316_s14] ss:$0 sm:$0xff] }
 0x31f   : > { %3571 = vrcp.f32 %v2017_v14 }
 0x320   : > { %3415 = vmatmul.mubr.msk.f32.vlgmr.msra.gmra.mxu0 %vm1677_vm3, %v2022_v15 }
 0x321   : > { %v3568_v18 = vpop.eup %3567  ;;  %3423 = vmatpush3.msra.mxu0 %v1600_v16  ;;  %3424 = vmatprep.mubr.msk.f32.mxu0 %vm3672_vm2, %v3671_v5  ;;  %v2747_v16 = vld [vmem:[%s3878_s2 + $0x10] sm:$0xff] }
 0x322   : > { %v2023_v19 = vmul.f32 %v3568_v18, %v3560_v1  ;;  %3432 = vmatprep.subr.mxu0 %v3671_v5  ;;  %v2751_v1 = vld [vmem:[%s3878_s2 + $0x30] sm:$0xff]  ;;  %v2745_v18 = vld [vmem:[%s3878_s2] sm:$0xff] }
 0x324   : > { %3420 = vmatmul.mubr.msk.f32.vlgmr.msra.gmra.mxu1 %vm1677_vm3, %v2023_v19  ;;  %v3148_v19 = vld [vmem:[%s672_s21] ss:$0 sm:$0xff] }
 0x325   : > { %3428 = vmatpush3.msra.mxu1 %v1670_v20  ;;  %3429 = vmatprep.mubr.msk.f32.mxu1 %vm3672_vm2, %v3671_v5 }
 0x326   : > { %3437 = vmatprep.subr.mxu1 %v3671_v5 }
 0x328   : > { %v3570_v21 = vpop.eup %3569 }
 0x329   : > { %v2024_v22 = vmul.f32 %v3570_v21, %v3562_v3  ;;  %v2749_v3 = vld [vmem:[%s3878_s2 + $0x20] sm:$0xff] }
 0x32b   : > { %3425 = vmatmul.mubr.msk.f32.vlgmr.msra.gmra.mxu0 %vm1677_vm3, %v2024_v22 }
 0x32c   : > { %v3572_v23 = vpop.eup %3571  ;;  %3434 = vmatprep.mubr.msk.f32.mxu0 %vm3672_vm2, %v3671_v5  ;;  %3433 = vmatpush3.msra.mxu0 %v2318_v25 }
 0x32d   : > { %v2025_v24 = vmul.f32 %v3572_v23, %v3564_v6  ;;  %3442 = vmatprep.subr.mxu0 %v3671_v5 }
 0x32f   : > { %3430 = vmatmul.mubr.msk.f32.vlgmr.msra.gmra.mxu1 %vm1677_vm3, %v2025_v24  ;;  %v3150_v24 = vld [vmem:[%s680_s4] ss:$0 sm:$0xff] }
 0x330   : > { %3439 = vmatprep.mubr.msk.f32.mxu1 %vm3672_vm2, %v3671_v5  ;;  %3438 = vmatpush3.msra.mxu1 %v2319_v26 }
 0x331   : > { %3447 = vmatprep.subr.mxu1 %v3671_v5 }
 0x3e0   : > { %v2095_v28 = vpop.f32.mrf.mxu0 }
 0x3e1   : > { %3435 = vmatmul.mubr.msk.f32.vlgmr.msra.gmra.mxu0 %vm1677_vm3, %v2095_v28 }
 0x3e2   : > { %v3416_v29 = vpop.f32.mrf.mxu0  ;;  %3443 = vmatpush3.msra.mxu0 %v2320_v27  ;;  %3444 = vmatprep.mubr.msk.f32.mxu0 %vm3672_vm2, %v3671_v5 }
 0x3e3   : > { %3452 = vmatprep.subr.mxu0 %v3671_v5 }
 0x3e4   : > { %v2168_v31 = vpop.f32.mrf.mxu1 }
 0x3e5   : > { %3440 = vmatmul.mubr.msk.f32.vlgmr.msra.gmra.mxu1 %vm1677_vm3, %v2168_v31 }
 0x3e6   : > { %v3421_v32 = vpop.f32.mrf.mxu1  ;;  %3448 = vmatpush3.msra.mxu1 %v2321_v30  ;;  %3449 = vmatprep.mubr.msk.f32.mxu1 %vm3672_vm2, %v3671_v5 }
 0x3e7   : > { %3463 = vmatprep.subr.mxu1 %v3671_v5 }
 0x3eb   : > { %v2241_v33 = vpop.f32.mrf.mxu0 }
 0x3ec   : > { %3445 = vmatmul.mubr.msk.f32.vlgmr.msra.gmra.mxu0 %vm1677_vm3, %v2241_v33 }
 0x3ed   : > { %v3426_v34 = vpop.f32.mrf.mxu0  ;;  %3460 = vmatprep.mubr.msk.f32.mxu0 %vm3672_vm2, %v3671_v5  ;;  %3453 = vmatpush3.msra.mxu0 %v2663_v61 }
 0x3ee   : > { %3454 = vmatprep.subr.mxu0 %v3671_v5 }
 0x3ef   : > { %v2314_v35 = vpop.f32.mrf.mxu1 }
 0x3f0   : > { %3450 = vmatmul.mubr.msk.f32.vlgmr.msra.gmra.mxu1 %vm1677_vm3, %v2314_v35 }
 0x3f1   : > { %v3431_v36 = vpop.f32.mrf.mxu1  ;;  %3479 = vmatprep.mubr.msk.f32.mxu1 %vm3672_vm2, %v3671_v5  ;;  %3464 = vmatpush3.msra.mxu1 %v2752_v0 }
 0x3f2   : > { %3465 = vmatprep.subr.mxu1 %v3671_v5 }
 0x3f3   : > { %3466 = vmatpush3.msra.mxu1 %v2751_v1 }
 0x3f4   : > { %3467 = vmatprep.subr.mxu1 %v3671_v5 }
 0x3f5   : > { %3468 = vmatpush3.msra.mxu1 %v2750_v2 }
 0x3f6   : > { %3469 = vmatprep.subr.mxu1 %v3671_v5 }
 0x3f7   : > { %3470 = vmatpush3.msra.mxu1 %v2749_v3 }
 0x3f8   : > { %3471 = vmatprep.subr.mxu1 %v3671_v5 }
 0x3f9   : > { %3472 = vmatpush3.msra.mxu1 %v2748_v4 }
 0x3fa   : > { %3473 = vmatprep.subr.mxu1 %v3671_v5 }
 0x3fb   : > { %3474 = vmatpush3.msra.mxu1 %v2747_v16 }
 0x3fc   : > { %3475 = vmatprep.subr.mxu1 %v3671_v5 }
 0x3fd   : > { %3476 = vmatpush3.msra.mxu1 %v2746_v17 }
 0x3fe   : > { %3477 = vmatprep.subr.mxu1 %v3671_v5 }
 0x3ff   : > { %3478 = vmatpush3.msra.mxu1 %v2745_v18 }
 0x4a1   : > { %v2391_v37 = vpop.f32.mrf.mxu0 }
 0x4a2   : > { %v2614_v43 = vsel %vm829_vm1, %v2391_v37, 0.0 }
 0x4a3   : > { %v3436_v38 = vpop.f32.mrf.mxu0 }
 0x4a4   : > { %v3152_v38 = vld [vmem:[%s683_s16] ss:$0 sm:$0xff] }
 0x4a5   : > { %v2464_v39 = vpop.f32.mrf.mxu1 }
 0x4a6   : > { %v2615_v41 = vsel %vm829_vm1, %v2464_v39, 0.0 }
 0x4a7   : > { %v3441_v40 = vpop.f32.mrf.mxu1  ;;  %v2616_v45 = vadd.f32 %v2615_v41, %v2614_v43 }
 0x4a8   : > { %v3153_v40 = vld [vmem:[%s686_s8] ss:$0 sm:$0xff] }
 0x4ac   : > { %v2537_v42 = vpop.f32.mrf.mxu0 }
 0x4ad   : > { %v2617_v44 = vsel %vm829_vm1, %v2537_v42, 0.0 }
 0x4ae   : > { %v3446_v46 = vpop.f32.mrf.mxu0  ;;  %v2618_v47 = vadd.f32 %v2617_v44, %v2616_v45 }
 0x4b0   : > { %v2610_v48 = vpop.f32.mrf.mxu1 }
 0x4b1   : > { %v2619_v49 = vsel %vm829_vm1, %v2610_v48, 0.0 }
 0x4b2   : > { %v2620_v51 = vadd.f32 %v2619_v49, %v2618_v47  ;;  %v3451_v52 = vpop.f32.mrf.mxu1 }
 0x4b4   : > { %v2628_v53 = vadd.f32 %v3145_v50, %v2620_v51 }
 0x4b6   : > { %v2629_v54 = vadd.f32 %v2628_v53, %v3908_v12  ;;  %v2662_v12 = vld [vmem:[%s3868_s18 + $0x10] sm:$0xff] }
 0x4b7   : > { %3455 = vmatpush3.msra.mxu0 %v2662_v12 }
 0x4b8   : > { %v2632_v55 = vsel %vm829_vm1, %v2629_v54, 0.0  ;;  %3456 = vmatprep.subr.mxu0 %v3671_v5 }
 0x4b9   : > { %2633 = vadd.xlane.f32.xlu0 %v2632_v55  ;;  %3457 = vmatpush3.msra.mxu0 %v2661_v62 }
 0x4ba   : > { %3458 = vmatprep.subr.mxu0 %v3671_v5 }
 0x4bb   : > { %3459 = vmatpush3.msra.mxu0 %v2660_v63 }
 0x542   : > { %v2634_v56 = vpop.xlane.xlu0 %2633 }
 0x543   : > { %v2636_v57 = vmul.f32 0.03125, %v2634_v56 }
 0x545   : > { %v2637_v58 = vsub.f32 %v2629_v54, %v2636_v57 }
 0x547   : > { %v2638_v59 = vmul.f32 %v2637_v58, %v2637_v58 }
 0x549   : > { %v2639_v60 = vsel %vm829_vm1, %v2638_v59, 0.0 }
 0x54a   : > { %2640 = vadd.xlane.f32.xlu1 %v2639_v60 }
 0x5d3   : > { %v2641_v6 = vpop.xlane.xlu1 %2640 }
 0x5d4   : > { %v2642_v7 = vmul.f32 0.03125, %v2641_v6 }
 0x5d6   : > { %v2643_v8 = vadd.f32 1e-05, %v2642_v7 }
 0x5d8   : > { %3573 = vrsqrt.f32 %v2643_v8 }
 0x5e5   : > { %v3574_v9 = vpop.eup %3573 }
 0x5e6   : > { %v2645_v11 = vmul.f32 %v3574_v9, %v2637_v58 }
 0x5e8   : > { %v2652_v14 = vmul.f32 %v3146_v10, %v2645_v11 }
 0x5ea   : > { %v2659_v15 = vadd.f32 %v3147_v13, %v2652_v14 }
 0x5ec   : > { %3461 = vmatmul.mubr.msk.f32.vlgmr.msra.gmra.mxu0 %vm829_vm1, %v2659_v15 }
 0x6ac   : > { %v2740_v20 = vpop.f32.mrf.mxu0 }
 0x6ad   : > { %v2741_v21 = vadd.f32 %v3148_v19, %v2740_v20 }
 0x6ae   : > { %v3462_v22 = vpop.f32.mrf.mxu0 }
 0x6af   : > { %v2744_v23 = vmax.f32 %v2741_v21, 0.0 }
 0x6b1   : > { %3480 = vmatmul.mubr.msk.f32.vlgmr.msra.gmra.mxu1 %vm2760_vm4, %v2744_v23 }
 0x771   : > { %v2830_v25 = vpop.f32.mrf.mxu1 }
 0x772   : > { %v2831_v5 = vadd.f32 %v3150_v24, %v2830_v25 }
 0x773   : > { %v3481_v26 = vpop.f32.mrf.mxu1 }
 0x774   : > { %v2834_v27 = vadd.f32 %v2831_v5, %v2659_v15 }
 0x776   : > { %v2837_v28 = vsel %vm829_vm1, %v2834_v27, 0.0 }
 0x777   : > { %2838 = vadd.xlane.f32.xlu0 %v2837_v28 }
 0x800   : > { %v2839_v29 = vpop.xlane.xlu0 %2838 }
 0x801   : > { %v2840_v30 = vmul.f32 0.03125, %v2839_v29 }
 0x803   : > { %v2841_v31 = vsub.f32 %v2834_v27, %v2840_v30 }
 0x805   : > { %v2842_v32 = vmul.f32 %v2841_v31, %v2841_v31 }
 0x807   : > { %v2843_v33 = vsel %vm829_vm1, %v2842_v32, 0.0 }
 0x808   : > { %2844 = vadd.xlane.f32.xlu1 %v2843_v33 }
 0x891   : > { %v2845_v34 = vpop.xlane.xlu1 %2844 }
 0x892   : > { %v2846_v35 = vmul.f32 0.03125, %v2845_v34 }
 0x894   : > { %v2847_v36 = vadd.f32 1e-05, %v2846_v35 }
 0x896   : > { %3575 = vrsqrt.f32 %v2847_v36 }
 0x8a3   : > { %v3576_v37 = vpop.eup %3575 }
 0x8a4   : > { %v2849_v39 = vmul.f32 %v3576_v37, %v2841_v31 }
 0x8a6   : > { %v2856_v41 = vmul.f32 %v3152_v38, %v2849_v39  ;;  %2868 = sbr.rel (%p3154_p1) target bundleno = 2220 (0x8ac), region = 84 }
 0x8a8   : > { %v2863_v42 = vadd.f32 %v3153_v40, %v2856_v41 }
 0x8aa   : > { %2864 = vst.msk [vmem:[#allocation2] sm:$0xff] %vm829_vm1, %v2863_v42 }
 0x8ab   : > { %2869 = vst.msk [vmem:[%s633_s0] sm:$0xff] %vm829_vm1, %v2863_v42 }
 0x8ac PF: > { %s4320_s1 = sld [smem:[#allocation10_spill]]  ;;  %s2884_s30 = sshll.u32 %s633_s0, 4  ;;  %s2885_s30 = int_to_ptr.vmem [resolvable:$true] %s2884_s30 }
 0x8ad   : > { %s4321_s16 = sld [smem:[#allocation7_spill]]  ;;  %s3577_s14 = scalar_lea.vmem %s2885_s30, 128 }
 0x8ae   : > { %s4323_s8 = sld [smem:[#allocation28_spill]]  ;;  %p3578_p2 = scmp.ne.s32.totalorder %s2885_s30, %s3577_s14 }
 0x8af   : > { %s3673_s27 = smov [#allocation3]  }
 0x8b0   : > { %p3579_p4 = pnand %p3578_p2, %p3798_p3  ;;  %s3581_s12 = sshll.u32 %s3673_s27, 4  ;;  %s3582_s12 = int_to_ptr.vmem [resolvable:$false] %s3581_s12 }
 0x8b1   : > { %s3583_s13 = scalar_lea.vmem %s3582_s12, 256  ;;  %p3584_p6 = scmp.lt.s32.totalorder %s2885_s30, %s3582_s12 }
 0x8b2   : > { %s3156_s17 = sshll.u32 %s4320_s1, 7  ;;  %p3580_p5 = pneg %p3579_p4 }
 0x8b3   : > { %s4324_s18 = sand.u32 1, %s4321_s16   ;;  %p3585_p7 = scmp.lt.s32.totalorder %s3583_s13, %s3577_s14 }
 0x8b4   : > { %s2882_s24 = scalar_lea.hbm %s4323_s8, %s3156_s17  ;;  %s2871_s22 = scalar_lea.sflag [#allocation4], %s4324_s18 }
 0x8b5   : > { %p3586_p8 = por %p3585_p7, %p3584_p6 }
 0x8b7   : > { %p3587_p10 = pnand %p3586_p8, %p3580_p5 }
 0x8b9   : > { %3590 = shalt.err (!%p3587_p10)
}
 0x8ba   : > { %s3591_s25 = scalar_lea.hbm %s2882_s24, 128  ;;  %s3595_s2 = scalar_lea.hbm %s4323_s8, 256 }
 0x8bb   : > { %p3592_p11 = scmp.ne.s32.totalorder %s2882_s24, %s3591_s25  ;;  %p3596_p0 = scmp.lt.s32.totalorder %s2882_s24, %s4323_s8 }
 0x8bc   : > { %p3597_p1 = scmp.lt.s32.totalorder %s3595_s2, %s3591_s25 }
 0x8bd   : > { %p3593_p12 = pnand %p3592_p11, %p3798_p3 }
 0x8be   : > { %p3598_p2 = por %p3597_p1, %p3596_p0 }
 0x8bf   : > { %p3594_p13 = pneg %p3593_p12 }
 0x8c1   : > { %p3599_p4 = pnand %p3598_p2, %p3594_p13 }
 0x8c3   : > { %3602 = shalt.err (!%p3599_p4)
}
 0x8c4   : > { %3484 = dma.vmem_to_hbm [thread:$0]  (%p3798_p3), %s2885_s30, 128, %s2882_s24, %s2871_s22  }
 0x8c5 PF: > { %s4325_s20 = sld [smem:[#allocation13_spill]] }
 0x8c6   : > { %s4326_s29 = sld [smem:[#allocation6_spill]] }
 0x8cb   : > { %p3490_p5 = scmp.ge.s32.totalorder %s4325_s20, 2 }
 0x8cc   : > { %s2896_s3 = sand.u32 1, %s4326_s29  }
 0x8cd   : > { %p3487_p6 = pnand %p3490_p5, %p3808_p9  ;;  %s2897_s1 = scalar_lea.sflag [#allocation4], %s2896_s3 }
 0x8cf   : > { %p3488_p7 = pneg %p3487_p6 }
 0x8d1   : > { %3636 = dma.done.wait (%p3488_p7), %s2897_s1, 128  }
 0x8d2   : > { %3638 = vsyncadd (%p3488_p7), %s2897_s1, 4294967168  ;;  %s27_s20 = sadd.s32 1, %s4325_s20   ;;  %s4328_s29 = sld [smem:[#allocation7_spill]] }
 0x8d3   : > { %p24_p8 = scmp.ge.s32.totalorder %s27_s20, 6   ;;  %s4329_s30 = sld [smem:[#allocation8_spill]] }
 0x8d4   : > { %s4330_s15 = sld [smem:[#allocation18_spill]] }
 0x8d5   : > { %s4331_s16 = sld [smem:[#allocation11_spill]]  ;;  %26 = sbr.rel (!%p24_p8) target bundleno = 15 (0xf), region = 158 }
 0x8d6   : > { %s4332_s17 = sld [smem:[#allocation12_spill]] }
 0x8d7   : > { %s4333_s18 = sld [smem:[#allocation14_spill]] }
 0x8d8   : > { %s4334_s19 = sld [smem:[#allocation16_spill]] }
 0x8da   :  { %2902 = vsyncpa [#allocation4], 1 }
 0x8db   :  { %2904 = vsyncpa [#allocation4 + $0x1], 1 }

</bundles_post_ra>
